<compile_context>
chip_gen: v7x
topology: tpu7x:2x2x1
jax: 0.10.0
libtpu: 0.0.40
codegen_flags: <defaults>
</compile_context>

<pallas_src>
import functools

import jax
import jax.numpy as jnp
from jax.experimental import pallas as pl
from jax.experimental.pallas import tpu as pltpu

LANE = 128    # lane width (last-dim alignment)
SUBLANE = 8   # f32 sublane width; x / output tiles are f32 so 8 is correct here.
              # (bf16 weights are passed as full-array blocks, which are exempt
              # from the (8,128) divisibility rule, so no 16-row rounding needed.)


def _round_up(x, m):
    return ((x + m - 1) // m) * m


# ----------------------------- fused Pallas kernel -------------------------- #
def _fnn_fused_kernel(*refs, num_layers: int, activation: str):
    """refs = (x_ref, w1, b1, ..., wL, bL, o_ref); one (block_m, K) batch tile.

    All layers run back-to-back; intermediate activations never leave
    vregs/VMEM.  Dots take bf16 operands (MXU-native) and accumulate in f32;
    bias-add and the hidden activation stay in f32 (safe on v5e too).
    """
    x_ref = refs[0]
    o_ref = refs[-1]
    wb = refs[1:-1]

    h = x_ref[...]                                       # (block_m, k_p) f32
    for i in range(num_layers):
        w = wb[2 * i][...]                               # bf16, 128-padded panel
        b = wb[2 * i + 1][...]                           # (1, n_p) f32 bias row
        h = jnp.dot(h.astype(w.dtype), w,
                    preferred_element_type=jnp.float32) + b
        if i < num_layers - 1:                           # hidden activation
            h = jnp.maximum(h, 0.0) if activation == "relu" else jnp.tanh(h)
    # The final layer's padded columns are exactly zero; drop them before the
    # store so the HBM writeback is un-padded (far fewer bytes when out_dim is
    # tiny) and no post-kernel slice is needed.
    o_ref[...] = h[:, : o_ref.shape[-1]].astype(o_ref.dtype)


# ------------------------------- params / padding --------------------------- #
def init_fnn_params(key, layer_sizes):
    """Xavier-normal weights, zero biases (matches the torch module's init).
    Weights stored as [in_features, out_features] so the kernel computes x @ W."""
    params = []
    for i in range(1, len(layer_sizes)):
        fan_in, fan_out = layer_sizes[i - 1], layer_sizes[i]
        key, sub = jax.random.split(key)
        std = (2.0 / (fan_in + fan_out)) ** 0.5
        w = std * jax.random.normal(sub, (fan_in, fan_out), dtype=jnp.float32)
        b = jnp.zeros((fan_out,), dtype=jnp.float32)
        params.append((w, b))
    return params


def prepare_fnn_params(params, weight_dtype=jnp.bfloat16):
    """ONE-TIME padding + cast (call once at init, NOT per forward call).

    Every feature dim is zero-padded to a multiple of 128 so every dot is
    lane-aligned; zero padding is exact (zero rows/cols contribute nothing and
    relu(0)=tanh(0)=0).  Weights are cast to bf16 (MXU-native, half the HBM/VMEM
    bytes); biases stay f32 because they are added to the f32 accumulator.
    """
    prepared = []
    for w, b in params:
        kin, kout = w.shape
        kin_p, kout_p = _round_up(kin, LANE), _round_up(kout, LANE)
        w_p = jnp.zeros((kin_p, kout_p), weight_dtype)
        w_p = w_p.at[:kin, :kout].set(w.astype(weight_dtype))
        b_p = jnp.zeros((1, kout_p), jnp.float32).at[0, :kout].set(b)
        prepared.append((w_p, b_p))
    return prepared


# ------------------------------ sizing helpers ------------------------------ #
def _vmem_limit_bytes():
    """Per-generation VMEM budget: ~3/4 of physical, capped at 96 MiB.
    -> ~96 MiB on v5e/v6e (128 MiB physical), ~48 MiB on v7x (64 MiB physical)."""
    try:
        cap = pltpu.get_tpu_info().vmem_capacity_bytes
    except Exception:
        cap = 64 * 1024 * 1024          # conservative fallback (v7x-sized)
    return int(min(96 * 1024 * 1024, cap * 3 // 4))


def _choose_block_m(M, tm, *, resident_bytes, bytes_per_row, vmem_limit):
    bm = min(_round_up(tm, SUBLANE), _round_up(M, SUBLANE))
    # Keep >= 2 grid steps when possible so both v7x TensorCores get work.
    if M > SUBLANE and pl.cdiv(M, bm) < 2:
        bm = _round_up(pl.cdiv(M, 2), SUBLANE)
    # Shrink until resident weights + pipelined tiles + live activations fit.
    while bm > SUBLANE and resident_bytes + bm * bytes_per_row > 0.7 * vmem_limit:
        bm = max(SUBLANE, _round_up(bm // 2, SUBLANE))
    return bm


# --------------------------------- forward ---------------------------------- #
def fnn_forward(prepared, x, *, out_dim, activation="relu", tm=512,
                single_buffer_weights=True):
    """Fused MLP forward: one pallas_call, 1-D 'parallel' grid over the batch."""
    assert activation in ("relu", "tanh")
    num_layers = len(prepared)
    k_p = prepared[0][0].shape[0]            # padded input feature dim
    assert out_dim <= prepared[-1][0].shape[1]

    orig_shape = x.shape
    if x.ndim != 2:
        x = x.reshape(-1, orig_shape[-1])
    M, in_dim = x.shape

    # Feature-pad x only if needed (skipped when in_dim is already 128-aligned).
    # NO batch padding: the grid uses cdiv and Pallas masks the ragged last block.
    if in_dim != k_p:
        x = jnp.zeros((M, k_p), x.dtype).at[:, :in_dim].set(x)

    vmem_limit = _vmem_limit_bytes()

    # Rough VMEM budget: resident weight/bias panels (1x if single-buffered) +
    # per-row cost of the double-buffered x/out tiles and live f32 activations.
    wb_mult = 1 if single_buffer_weights else 2
    resident_bytes = wb_mult * sum(
        w.size * w.dtype.itemsize + b.size * b.dtype.itemsize for w, b in prepared)
    max_width = max([k_p] + [w.shape[1] for w, _ in prepared])
    bytes_per_row = 4 * (2 * k_p + 2 * out_dim + 3 * max_width)
    block_m = _choose_block_m(M, tm, resident_bytes=resident_bytes,
                              bytes_per_row=bytes_per_row, vmem_limit=vmem_limit)
    grid = (pl.cdiv(M, block_m),)

    # Grid-invariant weight/bias panels: single-buffer them (constant index_map
    # => no point double-buffering; halves their VMEM footprint, key on v7x).
    wb_mode = dict(pipeline_mode=pl.Buffered(1)) if single_buffer_weights else {}
    in_specs = [pl.BlockSpec((block_m, k_p), lambda i: (i, 0))]
    flat_wb = []
    for w_p, b_p in prepared:
        in_specs.append(pl.BlockSpec(w_p.shape, lambda i: (0, 0), **wb_mode))
        in_specs.append(pl.BlockSpec(b_p.shape, lambda i: (0, 0), **wb_mode))
        flat_wb += [w_p, b_p]

    out = pl.pallas_call(
        functools.partial(_fnn_fused_kernel, num_layers=num_layers,
                          activation=activation),
        out_shape=jax.ShapeDtypeStruct((M, out_dim), x.dtype),
        grid=grid,
        in_specs=in_specs,
        out_specs=pl.BlockSpec((block_m, out_dim), lambda i: (i, 0)),
        compiler_params=pltpu.CompilerParams(
            # batch tiles are independent -> shard grid across both TCs on v7x
            dimension_semantics=("parallel",),
            vmem_limit_bytes=vmem_limit),
    )(x, *flat_wb)

    if len(orig_shape) != 2:
        out = out.reshape(*orig_shape[:-1], out_dim)
    return out


def fnn_reference(params, x, activation="relu"):
    act = {"relu": lambda v: jnp.maximum(v, 0.0), "tanh": jnp.tanh}[activation]
    h = x
    for w, b in params[:-1]:
        h = act(h @ w + b)
    w, b = params[-1]
    return h @ w + b


# ----------------------------------- main ------------------------------------ #
if __name__ == "__main__":
    layer_sizes = [16, 32, 32, 8]
    batch = 256

    key = jax.random.PRNGKey(0)
    key, xkey = jax.random.split(key)
    x = jax.random.normal(xkey, (batch, layer_sizes[0]), dtype=jnp.float32)

    params = init_fnn_params(key, layer_sizes)     # f32, torch-matching init
    prepared = prepare_fnn_params(params)          # pad + bf16 cast ONCE (off hot path)

    fwd = jax.jit(fnn_forward,
                  static_argnames=("out_dim", "activation", "tm",
                                   "single_buffer_weights"))
    try:
        out = jax.block_until_ready(fwd(prepared, x, out_dim=layer_sizes[-1]))
    except Exception:
        # Fallback if this JAX build rejects pl.Buffered(1) on grid-invariant
        # blocks: rerun with default double buffering (semantics identical).
        out = jax.block_until_ready(
            fwd(prepared, x, out_dim=layer_sizes[-1],
                single_buffer_weights=False))

    ref = fnn_reference(params, x)
    assert out.shape == (batch, layer_sizes[-1])
    # bf16 weights / bf16 dot inputs with f32 accumulation -> modest tolerance.
    assert jnp.allclose(out, ref, atol=5e-2, rtol=5e-2), \
        float(jnp.max(jnp.abs(out - ref)))
    print("KERNEL_OK")
</pallas_src>

<mosaic_0001>
module attributes {stable_mosaic.version = 11 : i64} {
  func.func @_fnn_fused_kernel(%arg0: i32, %arg1: memref<128x128xf32, #tpu.memory_space<vmem>>, %arg2: memref<128x128xbf16, #tpu.memory_space<vmem>>, %arg3: memref<1x128xf32, #tpu.memory_space<vmem>>, %arg4: memref<128x128xbf16, #tpu.memory_space<vmem>>, %arg5: memref<1x128xf32, #tpu.memory_space<vmem>>, %arg6: memref<128x128xbf16, #tpu.memory_space<vmem>>, %arg7: memref<1x128xf32, #tpu.memory_space<vmem>>, %arg8: memref<128x8xf32, #tpu.memory_space<vmem>>) attributes {dimension_semantics = [#tpu.dimension_semantics<parallel>], iteration_bounds = array<i64: 2>, scalar_prefetch = 0 : i64, scratch_operands = 0 : i64, tpu.core_type = #tpu.core_type<tc>, window_params = [{transform_indices = @transform_0, window_bounds = array<i64: 128, 128>}, {pipeline_mode = #tpu.pipeline_mode<synchronous>, transform_indices = @transform_1, window_bounds = array<i64: 128, 128>}, {pipeline_mode = #tpu.pipeline_mode<synchronous>, transform_indices = @transform_2, window_bounds = array<i64: 1, 128>}, {pipeline_mode = #tpu.pipeline_mode<synchronous>, transform_indices = @transform_3, window_bounds = array<i64: 128, 128>}, {pipeline_mode = #tpu.pipeline_mode<synchronous>, transform_indices = @transform_4, window_bounds = array<i64: 1, 128>}, {pipeline_mode = #tpu.pipeline_mode<synchronous>, transform_indices = @transform_5, window_bounds = array<i64: 128, 128>}, {pipeline_mode = #tpu.pipeline_mode<synchronous>, transform_indices = @transform_6, window_bounds = array<i64: 1, 128>}, {transform_indices = @transform_7, window_bounds = array<i64: 128, 8>}]} {
    %c0 = arith.constant 0 : index
    %c0_0 = arith.constant 0 : index
    %0 = vector.load %arg1[%c0, %c0_0] : memref<128x128xf32, #tpu.memory_space<vmem>>, vector<128x128xf32>
    %c0_1 = arith.constant 0 : index
    %c0_2 = arith.constant 0 : index
    %1 = vector.load %arg2[%c0_1, %c0_2] : memref<128x128xbf16, #tpu.memory_space<vmem>>, vector<128x128xbf16>
    %c0_3 = arith.constant 0 : index
    %c0_4 = arith.constant 0 : index
    %2 = vector.load %arg3[%c0_3, %c0_4] : memref<1x128xf32, #tpu.memory_space<vmem>>, vector<1x128xf32>
    %3 = arith.truncf %0 : vector<128x128xf32> to vector<128x128xbf16>
    %cst = arith.constant dense<0.000000e+00> : vector<128x128xf32>
    %4 = tpu.matmul %3, %1, %cst {dimension_numbers = #tpu.dot_dimension_numbers<[1], [0], [0], [1], [0, 0, 1, 1], [], []>} : vector<128x128xbf16>, vector<128x128xbf16>, vector<128x128xf32> -> vector<128x128xf32>
    %5 = vector.broadcast %2 : vector<1x128xf32> to vector<128x128xf32>
    %6 = arith.addf %4, %5 : vector<128x128xf32>
    %cst_5 = arith.constant 0.000000e+00 : f32
    %7 = vector.broadcast %cst_5 : f32 to vector<128x128xf32>
    %8 = arith.maximumf %6, %7 : vector<128x128xf32>
    %c0_6 = arith.constant 0 : index
    %c0_7 = arith.constant 0 : index
    %9 = vector.load %arg4[%c0_6, %c0_7] : memref<128x128xbf16, #tpu.memory_space<vmem>>, vector<128x128xbf16>
    %c0_8 = arith.constant 0 : index
    %c0_9 = arith.constant 0 : index
    %10 = vector.load %arg5[%c0_8, %c0_9] : memref<1x128xf32, #tpu.memory_space<vmem>>, vector<1x128xf32>
    %11 = arith.truncf %8 : vector<128x128xf32> to vector<128x128xbf16>
    %cst_10 = arith.constant dense<0.000000e+00> : vector<128x128xf32>
    %12 = tpu.matmul %11, %9, %cst_10 {dimension_numbers = #tpu.dot_dimension_numbers<[1], [0], [0], [1], [0, 0, 1, 1], [], []>} : vector<128x128xbf16>, vector<128x128xbf16>, vector<128x128xf32> -> vector<128x128xf32>
    %13 = vector.broadcast %10 : vector<1x128xf32> to vector<128x128xf32>
    %14 = arith.addf %12, %13 : vector<128x128xf32>
    %cst_11 = arith.constant 0.000000e+00 : f32
    %15 = vector.broadcast %cst_11 : f32 to vector<128x128xf32>
    %16 = arith.maximumf %14, %15 : vector<128x128xf32>
    %c0_12 = arith.constant 0 : index
    %c0_13 = arith.constant 0 : index
    %17 = vector.load %arg6[%c0_12, %c0_13] : memref<128x128xbf16, #tpu.memory_space<vmem>>, vector<128x128xbf16>
    %c0_14 = arith.constant 0 : index
    %c0_15 = arith.constant 0 : index
    %18 = vector.load %arg7[%c0_14, %c0_15] : memref<1x128xf32, #tpu.memory_space<vmem>>, vector<1x128xf32>
    %19 = arith.truncf %16 : vector<128x128xf32> to vector<128x128xbf16>
    %cst_16 = arith.constant dense<0.000000e+00> : vector<128x128xf32>
    %20 = tpu.matmul %19, %17, %cst_16 {dimension_numbers = #tpu.dot_dimension_numbers<[1], [0], [0], [1], [0, 0, 1, 1], [], []>} : vector<128x128xbf16>, vector<128x128xbf16>, vector<128x128xf32> -> vector<128x128xf32>
    %21 = vector.broadcast %18 : vector<1x128xf32> to vector<128x128xf32>
    %22 = arith.addf %20, %21 : vector<128x128xf32>
    %23 = vector.extract_strided_slice %22 {offsets = [0, 0], sizes = [128, 8], strides = [1, 1]} : vector<128x128xf32> to vector<128x8xf32>
    %c0_17 = arith.constant 0 : index
    %c0_18 = arith.constant 0 : index
    %24 = vector.load %arg8[%c0_17, %c0_18] : memref<128x8xf32, #tpu.memory_space<vmem>>, vector<128x8xf32>
    tpu.vector_store %arg8[%c0_17, %c0_18], %23 {strides = array<i32>} : memref<128x8xf32, #tpu.memory_space<vmem>>, vector<128x8xf32>,
    return
  }
  func.func @transform_0(%arg0: i32) -> (i32, i32) {
    %c0_i32 = arith.constant 0 : i32
    %c0_i32_0 = arith.constant 0 : i32
    return %arg0, %c0_i32 : i32, i32
  }
  func.func @transform_1(%arg0: i32) -> (i32, i32) {
    %c0_i32 = arith.constant 0 : i32
    %c0_i32_0 = arith.constant 0 : i32
    %c0_i32_1 = arith.constant 0 : i32
    return %c0_i32, %c0_i32_0 : i32, i32
  }
  func.func @transform_2(%arg0: i32) -> (i32, i32) {
    %c0_i32 = arith.constant 0 : i32
    %c0_i32_0 = arith.constant 0 : i32
    %c0_i32_1 = arith.constant 0 : i32
    return %c0_i32, %c0_i32_0 : i32, i32
  }
  func.func @transform_3(%arg0: i32) -> (i32, i32) {
    %c0_i32 = arith.constant 0 : i32
    %c0_i32_0 = arith.constant 0 : i32
    %c0_i32_1 = arith.constant 0 : i32
    return %c0_i32, %c0_i32_0 : i32, i32
  }
  func.func @transform_4(%arg0: i32) -> (i32, i32) {
    %c0_i32 = arith.constant 0 : i32
    %c0_i32_0 = arith.constant 0 : i32
    %c0_i32_1 = arith.constant 0 : i32
    return %c0_i32, %c0_i32_0 : i32, i32
  }
  func.func @transform_5(%arg0: i32) -> (i32, i32) {
    %c0_i32 = arith.constant 0 : i32
    %c0_i32_0 = arith.constant 0 : i32
    %c0_i32_1 = arith.constant 0 : i32
    return %c0_i32, %c0_i32_0 : i32, i32
  }
  func.func @transform_6(%arg0: i32) -> (i32, i32) {
    %c0_i32 = arith.constant 0 : i32
    %c0_i32_0 = arith.constant 0 : i32
    %c0_i32_1 = arith.constant 0 : i32
    return %c0_i32, %c0_i32_0 : i32, i32
  }
  func.func @transform_7(%arg0: i32) -> (i32, i32) {
    %c0_i32 = arith.constant 0 : i32
    %c0_i32_0 = arith.constant 0 : i32
    return %arg0, %c0_i32 : i32, i32
  }
}

module attributes {stable_mosaic.version = 11 : i64} {
  func.func @_fnn_fused_kernel(%arg0: i32, %arg1: memref<128x128xf32, #tpu.memory_space<vmem>>, %arg2: memref<128x128xbf16, #tpu.memory_space<vmem>>, %arg3: memref<1x128xf32, #tpu.memory_space<vmem>>, %arg4: memref<128x128xbf16, #tpu.memory_space<vmem>>, %arg5: memref<1x128xf32, #tpu.memory_space<vmem>>, %arg6: memref<128x128xbf16, #tpu.memory_space<vmem>>, %arg7: memref<1x128xf32, #tpu.memory_space<vmem>>, %arg8: memref<128x8xf32, #tpu.memory_space<vmem>>) attributes {dimension_semantics = [#tpu.dimension_semantics<parallel>], iteration_bounds = array<i64: 2>, scalar_prefetch = 0 : i64, scratch_operands = 0 : i64, tpu.core_type = #tpu.core_type<tc>, window_params = [{transform_indices = @transform_0, window_bounds = array<i64: 128, 128>}, {pipeline_mode = #tpu.pipeline_mode<synchronous>, transform_indices = @transform_1, window_bounds = array<i64: 128, 128>}, {pipeline_mode = #tpu.pipeline_mode<synchronous>, transform_indices = @transform_2, window_bounds = array<i64: 1, 128>}, {pipeline_mode = #tpu.pipeline_mode<synchronous>, transform_indices = @transform_3, window_bounds = array<i64: 128, 128>}, {pipeline_mode = #tpu.pipeline_mode<synchronous>, transform_indices = @transform_4, window_bounds = array<i64: 1, 128>}, {pipeline_mode = #tpu.pipeline_mode<synchronous>, transform_indices = @transform_5, window_bounds = array<i64: 128, 128>}, {pipeline_mode = #tpu.pipeline_mode<synchronous>, transform_indices = @transform_6, window_bounds = array<i64: 1, 128>}, {transform_indices = @transform_7, window_bounds = array<i64: 128, 8>}]} {
    %c0 = arith.constant 0 : index
    %c0_0 = arith.constant 0 : index
    %0 = vector.load %arg1[%c0, %c0_0] : memref<128x128xf32, #tpu.memory_space<vmem>>, vector<128x128xf32>
    %c0_1 = arith.constant 0 : index
    %c0_2 = arith.constant 0 : index
    %1 = vector.load %arg2[%c0_1, %c0_2] : memref<128x128xbf16, #tpu.memory_space<vmem>>, vector<128x128xbf16>
    %c0_3 = arith.constant 0 : index
    %c0_4 = arith.constant 0 : index
    %2 = vector.load %arg3[%c0_3, %c0_4] : memref<1x128xf32, #tpu.memory_space<vmem>>, vector<1x128xf32>
    %3 = arith.truncf %0 : vector<128x128xf32> to vector<128x128xbf16>
    %cst = arith.constant dense<0.000000e+00> : vector<128x128xf32>
    %4 = tpu.matmul %3, %1, %cst {dimension_numbers = #tpu.dot_dimension_numbers<[1], [0], [0], [1], [0, 0, 1, 1], [], []>} : vector<128x128xbf16>, vector<128x128xbf16>, vector<128x128xf32> -> vector<128x128xf32>
    %5 = vector.broadcast %2 : vector<1x128xf32> to vector<128x128xf32>
    %6 = arith.addf %4, %5 : vector<128x128xf32>
    %cst_5 = arith.constant 0.000000e+00 : f32
    %7 = vector.broadcast %cst_5 : f32 to vector<128x128xf32>
    %8 = arith.maximumf %6, %7 : vector<128x128xf32>
    %c0_6 = arith.constant 0 : index
    %c0_7 = arith.constant 0 : index
    %9 = vector.load %arg4[%c0_6, %c0_7] : memref<128x128xbf16, #tpu.memory_space<vmem>>, vector<128x128xbf16>
    %c0_8 = arith.constant 0 : index
    %c0_9 = arith.constant 0 : index
    %10 = vector.load %arg5[%c0_8, %c0_9] : memref<1x128xf32, #tpu.memory_space<vmem>>, vector<1x128xf32>
    %11 = arith.truncf %8 : vector<128x128xf32> to vector<128x128xbf16>
    %cst_10 = arith.constant dense<0.000000e+00> : vector<128x128xf32>
    %12 = tpu.matmul %11, %9, %cst_10 {dimension_numbers = #tpu.dot_dimension_numbers<[1], [0], [0], [1], [0, 0, 1, 1], [], []>} : vector<128x128xbf16>, vector<128x128xbf16>, vector<128x128xf32> -> vector<128x128xf32>
    %13 = vector.broadcast %10 : vector<1x128xf32> to vector<128x128xf32>
    %14 = arith.addf %12, %13 : vector<128x128xf32>
    %cst_11 = arith.constant 0.000000e+00 : f32
    %15 = vector.broadcast %cst_11 : f32 to vector<128x128xf32>
    %16 = arith.maximumf %14, %15 : vector<128x128xf32>
    %c0_12 = arith.constant 0 : index
    %c0_13 = arith.constant 0 : index
    %17 = vector.load %arg6[%c0_12, %c0_13] : memref<128x128xbf16, #tpu.memory_space<vmem>>, vector<128x128xbf16>
    %c0_14 = arith.constant 0 : index
    %c0_15 = arith.constant 0 : index
    %18 = vector.load %arg7[%c0_14, %c0_15] : memref<1x128xf32, #tpu.memory_space<vmem>>, vector<1x128xf32>
    %19 = arith.truncf %16 : vector<128x128xf32> to vector<128x128xbf16>
    %cst_16 = arith.constant dense<0.000000e+00> : vector<128x128xf32>
    %20 = tpu.matmul %19, %17, %cst_16 {dimension_numbers = #tpu.dot_dimension_numbers<[1], [0], [0], [1], [0, 0, 1, 1], [], []>} : vector<128x128xbf16>, vector<128x128xbf16>, vector<128x128xf32> -> vector<128x128xf32>
    %21 = vector.broadcast %18 : vector<1x128xf32> to vector<128x128xf32>
    %22 = arith.addf %20, %21 : vector<128x128xf32>
    %23 = vector.extract_strided_slice %22 {offsets = [0, 0], sizes = [128, 8], strides = [1, 1]} : vector<128x128xf32> to vector<128x8xf32>
    %c0_17 = arith.constant 0 : index
    %c0_18 = arith.constant 0 : index
    %24 = vector.load %arg8[%c0_17, %c0_18] : memref<128x8xf32, #tpu.memory_space<vmem>>, vector<128x8xf32>
    tpu.vector_store %arg8[%c0_17, %c0_18], %23 {strides = array<i32>} : memref<128x8xf32, #tpu.memory_space<vmem>>, vector<128x8xf32>,
    return
  }
  func.func @transform_0(%arg0: i32) -> (i32, i32) {
    %c0_i32 = arith.constant 0 : i32
    %c0_i32_0 = arith.constant 0 : i32
    return %arg0, %c0_i32 : i32, i32
  }
  func.func @transform_1(%arg0: i32) -> (i32, i32) {
    %c0_i32 = arith.constant 0 : i32
    %c0_i32_0 = arith.constant 0 : i32
    %c0_i32_1 = arith.constant 0 : i32
    return %c0_i32, %c0_i32_0 : i32, i32
  }
  func.func @transform_2(%arg0: i32) -> (i32, i32) {
    %c0_i32 = arith.constant 0 : i32
    %c0_i32_0 = arith.constant 0 : i32
    %c0_i32_1 = arith.constant 0 : i32
    return %c0_i32, %c0_i32_0 : i32, i32
  }
  func.func @transform_3(%arg0: i32) -> (i32, i32) {
    %c0_i32 = arith.constant 0 : i32
    %c0_i32_0 = arith.constant 0 : i32
    %c0_i32_1 = arith.constant 0 : i32
    return %c0_i32, %c0_i32_0 : i32, i32
  }
  func.func @transform_4(%arg0: i32) -> (i32, i32) {
    %c0_i32 = arith.constant 0 : i32
    %c0_i32_0 = arith.constant 0 : i32
    %c0_i32_1 = arith.constant 0 : i32
    return %c0_i32, %c0_i32_0 : i32, i32
  }
  func.func @transform_5(%arg0: i32) -> (i32, i32) {
    %c0_i32 = arith.constant 0 : i32
    %c0_i32_0 = arith.constant 0 : i32
    %c0_i32_1 = arith.constant 0 : i32
    return %c0_i32, %c0_i32_0 : i32, i32
  }
  func.func @transform_6(%arg0: i32) -> (i32, i32) {
    %c0_i32 = arith.constant 0 : i32
    %c0_i32_0 = arith.constant 0 : i32
    %c0_i32_1 = arith.constant 0 : i32
    return %c0_i32, %c0_i32_0 : i32, i32
  }
  func.func @transform_7(%arg0: i32) -> (i32, i32) {
    %c0_i32 = arith.constant 0 : i32
    %c0_i32_0 = arith.constant 0 : i32
    return %arg0, %c0_i32 : i32, i32
  }
}

</mosaic_0001>

<bundles_post_ra>
// kernel: fnn_forward.1
= control target key start
LH: loop header
LB: loop body
LE: loop exit
PB: predicated region body
PF: predicated region fallthrough
CT: control target
= control target key end

     0   :  { %s1210_s24 = smov 0   ;;  %s1403_s0 = inlined_call_operand.vmem [shape: f32[256,128], index: 0, kind: input, shape index: {}]   ;;  %s1404_s1 = inlined_call_operand.vmem [shape: bf16[128,128], index: 1, kind: input, shape index: {}]   ;;  %s1405_s2 = inlined_call_operand.vmem [shape: f32[1,128], index: 2, kind: input, shape index: {}]   ;;  %s1406_s3 = inlined_call_operand.vmem [shape: bf16[128,128], index: 3, kind: input, shape index: {}]   ;;  %s1407_s4 = inlined_call_operand.vmem [shape: f32[1,128], index: 4, kind: input, shape index: {}]   ;;  %s1408_s5 = inlined_call_operand.vmem [shape: bf16[128,128], index: 5, kind: input, shape index: {}]   ;;  %s1409_s6 = inlined_call_operand.vmem [shape: f32[1,128], index: 6, kind: input, shape index: {}]   ;;  %s1410_s7 = inlined_call_operand.vmem [shape: f32[256,8], index: 7, kind: output, shape index: {}]  }
   0x1 LB: > { %s932_s25 = sadd.s32 4294967295, %s1168_s24   ;;  %p936_p0 = scmp.ge.s32.totalorder %s1168_s24, 1  ;;  %s1168_s24 = sphi %s1210_s24, %s17_s24  }
   0x2   : > { %p238_p1 = scmp.lt.s32.totalorder %s1168_s24, 3 }
   0x4   : > { %p239_p2 = pnand %p936_p0, %p238_p1 }
   0x5   : > { %v1138_v0 = vld [vmem:[%s1404_s1] sm:$0xff] (!%p239_p2)   ;;  %s937_s28 = sshll.u32 (!%p239_p2), %s932_s25, 4  ;;  %v1139_v1 = vld [vmem:[%s1404_s1 + $0x8] sm:$0xff] (!%p239_p2)   ;;  %v1140_v2 = vld [vmem:[%s1404_s1 + $0x10] sm:$0xff] (!%p239_p2)   ;;  %vm859_vm0 = vcmask (!%p239_p2), 64512  }
   0x6   : > { %242 = sbr.rel (%p239_p2) target bundleno = 724 (0x2d4), region = 48  ;;  %p271_p3 = scmp.lt.s32.totalorder (!%p239_p2), %s937_s28, 31  ;;  %1018 = vmatprep.subr.bf16.mxu0 (!%p239_p2), %v1138_v0  ;;  %v1141_v3 = vld [vmem:[%s1404_s1 + $0x18] sm:$0xff] (!%p239_p2)   ;;  %v1142_v7 = vld [vmem:[%s1404_s1 + $0x20] sm:$0xff] (!%p239_p2)   ;;  %v1147_v9 = vld [vmem:[%s1406_s3 + $0x8] sm:$0xff] (!%p239_p2)  }
   0x7   : > { %1019 = vmatpush3.bf16.msra.mxu0 (!%p239_p2), %v1138_v0  ;;  %v1146_v8 = vld [vmem:[%s1406_s3] sm:$0xff] (!%p239_p2)   ;;  %v1143_v10 = vld [vmem:[%s1404_s1 + $0x28] sm:$0xff] (!%p239_p2)   ;;  %v1148_v11 = vld [vmem:[%s1406_s3 + $0x10] sm:$0xff] (!%p239_p2)  }
   0x8   : > { %1020 = vmatprep.subr.bf16.mxu0 (!%p239_p2), %v1139_v1  ;;  %1050 = vmatprep.subr.bf16.mxu1 (!%p239_p2), %v1146_v8  ;;  %v1144_v12 = vld [vmem:[%s1404_s1 + $0x30] sm:$0xff] (!%p239_p2)   ;;  %v1149_v13 = vld [vmem:[%s1406_s3 + $0x18] sm:$0xff] (!%p239_p2)   ;;  %v1150_v15 = vld [vmem:[%s1406_s3 + $0x20] sm:$0xff] (!%p239_p2)  }
   0x9   : > { %1051 = vmatpush3.bf16.msra.mxu1 (!%p239_p2), %v1146_v8  ;;  %v1145_v14 = vld [vmem:[%s1404_s1 + $0x38] sm:$0xff] (!%p239_p2)   ;;  %v1151_v21 = vld [vmem:[%s1406_s3 + $0x28] sm:$0xff] (!%p239_p2)   ;;  %v1152_v38 = vld [vmem:[%s1406_s3 + $0x30] sm:$0xff] (!%p239_p2)  }
   0xa   : > { %1052 = vmatprep.subr.bf16.mxu1 (!%p239_p2), %v1147_v9  ;;  %v1153_v39 = vld [vmem:[%s1406_s3 + $0x38] sm:$0xff] (!%p239_p2)   ;;  %v1154_v40 = vld [vmem:[%s1408_s5] sm:$0xff] (!%p239_p2)   ;;  %v1155_v41 = vld [vmem:[%s1408_s5 + $0x8] sm:$0xff] (!%p239_p2)  }
   0xb   : > { %1021 = vmatpush3.bf16.msra.mxu0 (!%p239_p2), %v1139_v1  ;;  %v1156_v42 = vld [vmem:[%s1408_s5 + $0x10] sm:$0xff] (!%p239_p2)   ;;  %v1304_v43 = vld [vmem:[%s1408_s5 + $0x18] sm:$0xff] (!%p239_p2)   ;;  %v1310_v44 = vld [vmem:[%s1408_s5 + $0x20] sm:$0xff] (!%p239_p2)  }
   0xc   : > { %1022 = vmatprep.subr.bf16.mxu0 (!%p239_p2), %v1140_v2  ;;  %v1317_v45 = vld [vmem:[%s1408_s5 + $0x28] sm:$0xff] (!%p239_p2)   ;;  %v1325_v46 = vld [vmem:[%s1405_s2] ss:$0 sm:$0xff] (!%p239_p2) }
   0xd   : > { %s1412_s28 = smov (!%p271_p3, %s937_s28), 31  ;;  %1053 = vmatpush3.bf16.msra.mxu1 %v1147_v9 }
   0xe   : > { %s938_s10 = sshll.u32 %s1412_s28, 3  ;;  %1054 = vmatprep.subr.bf16.mxu1 %v1148_v11 }
   0xf   : > { %s1235_s13 = scalar_lea.vmem %s1403_s0, %s938_s10  ;;  %1023 = vmatpush3.bf16.msra.mxu0 %v1140_v2  ;;  %s1366_s25 = scalar_lea.vmem %s1410_s7, %s938_s10 }
  0x10   : > { %v283_v4 = vld [vmem:[%s1235_s13] sm:$0xff]  ;;  %v284_v5 = vld [vmem:[%s1235_s13 + $0x8] sm:$0xff]  ;;  %1024 = vmatprep.subr.bf16.mxu0 %v1141_v3  ;;  %v285_v16 = vld [vmem:[%s1235_s13 + $0x10] sm:$0xff] }
  0x11   : > { %v316_v6 = vpack.c.bf16 %v284_v5, %v283_v4  ;;  %1055 = vmatpush3.bf16.msra.mxu1 %v1148_v11  ;;  %v286_v17 = vld [vmem:[%s1235_s13 + $0x18] sm:$0xff]  ;;  %v287_v18 = vld [vmem:[%s1235_s13 + $0x20] sm:$0xff]  ;;  %v288_v19 = vld [vmem:[%s1235_s13 + $0x28] sm:$0xff] }
  0x12   : > { %1056 = vmatprep.subr.bf16.mxu1 %v1149_v13  ;;  %v317_v20 = vpack.c.bf16 %v286_v17, %v285_v16  ;;  %v318_v22 = vpack.c.bf16 %v288_v19, %v287_v18  ;;  %v289_v23 = vld [vmem:[%s1235_s13 + $0x30] sm:$0xff]  ;;  %v290_v24 = vld [vmem:[%s1235_s13 + $0x38] sm:$0xff]  ;;  %v291_v25 = vld [vmem:[%s1235_s13 + $0x40] sm:$0xff] }
  0x13   : > { %1034 = vmatprep.mubr.bf16.mxu0 %v316_v6  ;;  %1025 = vmatpush3.bf16.msra.mxu0 %v1141_v3  ;;  %v292_v26 = vld [vmem:[%s1235_s13 + $0x48] sm:$0xff]  ;;  %v319_v27 = vpack.c.bf16 %v290_v24, %v289_v23  ;;  %v293_v29 = vld [vmem:[%s1235_s13 + $0x50] sm:$0xff]  ;;  %v294_v30 = vld [vmem:[%s1235_s13 + $0x58] sm:$0xff] }
  0x14   : > { %1026 = vmatprep.subr.bf16.mxu0 %v1142_v7  ;;  %v320_v28 = vpack.c.bf16 %v292_v26, %v291_v25  ;;  %v295_v31 = vld [vmem:[%s1235_s13 + $0x60] sm:$0xff]  ;;  %v296_v32 = vld [vmem:[%s1235_s13 + $0x68] sm:$0xff]  ;;  %v321_v33 = vpack.c.bf16 %v294_v30, %v293_v29  ;;  %v297_v35 = vld [vmem:[%s1235_s13 + $0x70] sm:$0xff] }
  0x15   : > { %1057 = vmatpush3.bf16.msra.mxu1 %v1149_v13  ;;  %v322_v34 = vpack.c.bf16 %v296_v32, %v295_v31  ;;  %v298_v36 = vld [vmem:[%s1235_s13 + $0x78] sm:$0xff] }
  0x16   : > { %1058 = vmatprep.subr.bf16.mxu1 %v1150_v15  ;;  %v323_v37 = vpack.c.bf16 %v298_v36, %v297_v35 }
  0x17   : > { %1027 = vmatpush3.bf16.msra.mxu0 %v1142_v7 }
  0x18   : > { %1028 = vmatprep.subr.bf16.mxu0 %v1143_v10 }
  0x19   : > { %1059 = vmatpush3.bf16.msra.mxu1 %v1150_v15 }
  0x1a   : > { %1060 = vmatprep.subr.bf16.mxu1 %v1151_v21 }
  0x1b   : > { %1029 = vmatpush3.bf16.msra.mxu0 %v1143_v10 }
  0x1c   : > { %1030 = vmatprep.subr.bf16.mxu0 %v1144_v12 }
  0x1d   : > { %1061 = vmatpush3.bf16.msra.mxu1 %v1151_v21 }
  0x1e   : > { %1062 = vmatprep.subr.bf16.mxu1 %v1152_v38 }
  0x1f   : > { %1031 = vmatpush3.bf16.msra.mxu0 %v1144_v12 }
  0x20   : > { %1032 = vmatprep.subr.bf16.mxu0 %v1145_v14 }
  0x21   : > { %1063 = vmatpush3.bf16.msra.mxu1 %v1152_v38 }
  0x22   : > { %1064 = vmatprep.subr.bf16.mxu1 %v1153_v39 }
  0x23   : > { %1033 = vmatpush3.bf16.msra.mxu0 %v1145_v14 }
  0x24   : > { %1082 = vmatprep.subr.bf16.mxu0 %v1154_v40 }
  0x25   : > { %1065 = vmatpush3.bf16.msra.mxu1 %v1153_v39  ;;  %v1160_v39 = vld [vmem:[%s1408_s5 + $0x30] sm:$0xff]  }
  0x26   : > { %1035 = vmatmul.mubr.bf16.vlgmr.msra.gmra.mrb[0].mxu0 %v317_v20  ;;  %1114 = vmatprep.subr.bf16.mxu1 %v1154_v40 }
  0x27   : > { %1038 = vmatprep.mubr.bf16.mxu0 %v318_v22  ;;  %1083 = vmatpush3.bf16.msra.mxu0 %v1154_v40 }
  0x28   : > { %1084 = vmatprep.subr.bf16.mxu0 %v1155_v41 }
  0x2b   : > { %1085 = vmatpush3.bf16.msra.mxu0 %v1155_v41 }
  0x2c   : > { %1086 = vmatprep.subr.bf16.mxu0 %v1156_v42 }
  0x2e   : > { %1039 = vmatmul.mubr.bf16.gmra.mrb[4].mxu0 %v319_v27 }
  0x2f   : > { %1042 = vmatprep.mubr.bf16.mxu0 %v320_v28  ;;  %1087 = vmatpush3.bf16.msra.mxu0 %v1156_v42 }
  0x30   : > { %1088 = vmatprep.subr.bf16.mxu0 %v1304_v43 }
  0x33   : > { %1089 = vmatpush3.bf16.msra.mxu0 %v1304_v43 }
  0x34   : > { %1090 = vmatprep.subr.bf16.mxu0 %v1310_v44 }
  0x36   : > { %1043 = vmatmul.mubr.bf16.gmra.mrb[8].mxu0 %v321_v33 }
  0x37   : > { %1046 = vmatprep.mubr.bf16.mxu0 %v322_v34  ;;  %1091 = vmatpush3.bf16.msra.mxu0 %v1310_v44 }
  0x38   : > { %1092 = vmatprep.subr.bf16.mxu0 %v1317_v45 }
  0x3b   : > { %1093 = vmatpush3.bf16.msra.mxu0 %v1317_v45 }
  0x3c   : > { %1094 = vmatprep.subr.bf16.mxu0 %v1160_v39 }
  0x3e   : > { %1047 = vmatmul.mubr.bf16.gmra.mrb[12].mxu0 %v323_v37 }
  0x3f   : > { %1095 = vmatpush3.bf16.msra.mxu0 %v1160_v39 }
  0xf9   : > { %v1036_v47 = vpop.f32.mrb[0].mxu0 }
  0xfa   : > { %v421_v48 = vadd.f32 %v1036_v47, %v1325_v46  ;;  %v412_v49 = vpop.f32.mrb[1].mxu0 }
  0xfb   : > { %v413_v50 = vadd.f32 %v1325_v46, %v412_v49  ;;  %v1037_v51 = vpop.f32.mrb[2].mxu0 }
  0xfc   : > { %v424_v52 = vadd.f32 %v1037_v51, %v1325_v46  ;;  %v415_v53 = vpop.f32.mrb[3].mxu0  ;;  %v477_v55 = vmax.f32 %v421_v48, 0.0 }
  0xfd   : > { %v416_v54 = vadd.f32 %v1325_v46, %v415_v53  ;;  %v475_v57 = vmax.f32 %v413_v50, 0.0 }
  0xfe   : > { %v478_v56 = vmax.f32 %v424_v52, 0.0 }
  0xff   : > { %v476_v58 = vmax.f32 %v416_v54, 0.0 }
 0x100   : > { %v509_v59 = vpack.c.bf16 %v478_v56, %v477_v55 }
 0x101   : > { %v1040_v60 = vpop.f32.mrb[4].mxu0  ;;  %v508_v61 = vpack.c.bf16 %v476_v58, %v475_v57 }
 0x102   : > { %v437_v62 = vadd.f32 %v1040_v60, %v1325_v46  ;;  %v428_v63 = vpop.f32.mrb[5].mxu0 }
 0x103   : > { %v429_v0 = vadd.f32 %v1325_v46, %v428_v63  ;;  %v1041_v1 = vpop.f32.mrb[6].mxu0  ;;  %1066 = vmatprep.mubr.bf16.mxu1 %v508_v61 }
 0x104   : > { %v440_v2 = vadd.f32 %v1041_v1, %v1325_v46  ;;  %v431_v3 = vpop.f32.mrb[7].mxu0  ;;  %1067 = vmatmul.mubr.bf16.vlgmr.msra.gmra.mrb[0].mxu1 %v509_v59  ;;  %v481_v5 = vmax.f32 %v437_v62, 0.0 }
 0x105   : > { %v432_v4 = vadd.f32 %v1325_v46, %v431_v3  ;;  %1122 = vmatpush3.bf16.msra.mxu1 %v1154_v40  ;;  %v479_v7 = vmax.f32 %v429_v0, 0.0  ;;  %v1161_v40 = vld [vmem:[%s1408_s5 + $0x38] sm:$0xff]  }
 0x106   : > { %v482_v6 = vmax.f32 %v440_v2, 0.0  ;;  %1115 = vmatprep.subr.bf16.mxu1 %v1155_v41  ;;  %1096 = vmatprep.subr.bf16.mxu0 %v1161_v40 }
 0x107   : > { %v480_v8 = vmax.f32 %v432_v4, 0.0  ;;  %1097 = vmatpush3.bf16.msra.mxu0 %v1161_v40 }
 0x108   : > { %v511_v9 = vpack.c.bf16 %v482_v6, %v481_v5 }
 0x109   : > { %v510_v10 = vpack.c.bf16 %v480_v8, %v479_v7  ;;  %v1044_v11 = vpop.f32.mrb[8].mxu0  ;;  %1123 = vmatpush3.bf16.msra.mxu1 %v1155_v41  ;;  %v950_v41 = vld [vmem:[%s1407_s4] ss:$0 sm:$0xff] }
 0x10a   : > { %v453_v12 = vadd.f32 %v1044_v11, %v1325_v46  ;;  %v444_v13 = vpop.f32.mrb[9].mxu0  ;;  %1116 = vmatprep.subr.bf16.mxu1 %v1156_v42 }
 0x10b   : > { %v445_v14 = vadd.f32 %v1325_v46, %v444_v13  ;;  %v1045_v15 = vpop.f32.mrb[10].mxu0  ;;  %1070 = vmatprep.mubr.bf16.mxu1 %v510_v10 }
 0x10c   : > { %v456_v16 = vadd.f32 %v1045_v15, %v1325_v46  ;;  %v447_v17 = vpop.f32.mrb[11].mxu0  ;;  %1071 = vmatmul.mubr.bf16.gmra.mrb[4].mxu1 %v511_v9  ;;  %v485_v19 = vmax.f32 %v453_v12, 0.0 }
 0x10d   : > { %v448_v18 = vadd.f32 %v1325_v46, %v447_v17  ;;  %1124 = vmatpush3.bf16.msra.mxu1 %v1156_v42  ;;  %v483_v21 = vmax.f32 %v445_v14, 0.0 }
 0x10e   : > { %v486_v20 = vmax.f32 %v456_v16, 0.0  ;;  %1117 = vmatprep.subr.bf16.mxu1 %v1304_v43 }
 0x10f   : > { %v484_v22 = vmax.f32 %v448_v18, 0.0 }
 0x110   : > { %v513_v23 = vpack.c.bf16 %v486_v20, %v485_v19 }
 0x111   : > { %v512_v24 = vpack.c.bf16 %v484_v22, %v483_v21  ;;  %v1048_v25 = vpop.f32.mrb[12].mxu0  ;;  %1125 = vmatpush3.bf16.msra.mxu1 %v1304_v43 }
 0x112   : > { %v469_v26 = vadd.f32 %v1048_v25, %v1325_v46  ;;  %v460_v27 = vpop.f32.mrb[13].mxu0  ;;  %1118 = vmatprep.subr.bf16.mxu1 %v1310_v44 }
 0x113   : > { %v461_v28 = vadd.f32 %v1325_v46, %v460_v27  ;;  %v1049_v29 = vpop.f32.mrb[14].mxu0  ;;  %1074 = vmatprep.mubr.bf16.mxu1 %v512_v24 }
 0x114   : > { %v472_v30 = vadd.f32 %v1049_v29, %v1325_v46  ;;  %v463_v31 = vpop.f32.mrb[15].mxu0  ;;  %1075 = vmatmul.mubr.bf16.gmra.mrb[8].mxu1 %v513_v23  ;;  %v489_v33 = vmax.f32 %v469_v26, 0.0 }
 0x115   : > { %v464_v32 = vadd.f32 %v1325_v46, %v463_v31  ;;  %1126 = vmatpush3.bf16.msra.mxu1 %v1310_v44  ;;  %v487_v35 = vmax.f32 %v461_v28, 0.0 }
 0x116   : > { %v490_v34 = vmax.f32 %v472_v30, 0.0  ;;  %1119 = vmatprep.subr.bf16.mxu1 %v1317_v45 }
 0x117   : > { %v488_v36 = vmax.f32 %v464_v32, 0.0 }
 0x118   : > { %v515_v37 = vpack.c.bf16 %v490_v34, %v489_v33  ;;  %v959_v34 = vld [vmem:[%s1409_s6] ss:$0 sm:$0xff] }
 0x119   : > { %v514_v38 = vpack.c.bf16 %v488_v36, %v487_v35  ;;  %1127 = vmatpush3.bf16.msra.mxu1 %v1317_v45 }
 0x11a   : > { %1120 = vmatprep.subr.bf16.mxu1 %v1160_v39 }
 0x11b   : > { %1078 = vmatprep.mubr.bf16.mxu1 %v514_v38 }
 0x11c   : > { %1079 = vmatmul.mubr.bf16.gmra.mrb[12].mxu1 %v515_v37 }
 0x11d   : > { %1128 = vmatpush3.bf16.msra.mxu1 %v1160_v39 }
 0x11e   : > { %1121 = vmatprep.subr.bf16.mxu1 %v1161_v40 }
 0x121   : > { %1129 = vmatpush3.bf16.msra.mxu1 %v1161_v40 }
 0x1d7   : > { %v1068_v42 = vpop.f32.mrb[0].mxu1 }
 0x1d8   : > { %v613_v43 = vadd.f32 %v1068_v42, %v950_v41  ;;  %v604_v44 = vpop.f32.mrb[1].mxu1 }
 0x1d9   : > { %v605_v45 = vadd.f32 %v950_v41, %v604_v44  ;;  %v1069_v46 = vpop.f32.mrb[2].mxu1 }
 0x1da   : > { %v616_v47 = vadd.f32 %v1069_v46, %v950_v41  ;;  %v607_v48 = vpop.f32.mrb[3].mxu1  ;;  %v669_v50 = vmax.f32 %v613_v43, 0.0 }
 0x1db   : > { %v608_v49 = vadd.f32 %v950_v41, %v607_v48  ;;  %v667_v52 = vmax.f32 %v605_v45, 0.0 }
 0x1dc   : > { %v670_v51 = vmax.f32 %v616_v47, 0.0 }
 0x1dd   : > { %v668_v53 = vmax.f32 %v608_v49, 0.0 }
 0x1de   : > { %v701_v54 = vpack.c.bf16 %v670_v51, %v669_v50 }
 0x1df   : > { %v700_v55 = vpack.c.bf16 %v668_v53, %v667_v52  ;;  %v1072_v56 = vpop.f32.mrb[4].mxu1 }
 0x1e0   : > { %v629_v57 = vadd.f32 %v1072_v56, %v950_v41  ;;  %v620_v58 = vpop.f32.mrb[5].mxu1 }
 0x1e1   : > { %v621_v59 = vadd.f32 %v950_v41, %v620_v58  ;;  %v1073_v60 = vpop.f32.mrb[6].mxu1  ;;  %1098 = vmatprep.mubr.bf16.mxu0 %v700_v55 }
 0x1e2   : > { %v632_v61 = vadd.f32 %v1073_v60, %v950_v41  ;;  %v623_v62 = vpop.f32.mrb[7].mxu1  ;;  %1099 = vmatmul.mubr.bf16.vlgmr.msra.gmra.mrb[16].mxu0 %v701_v54  ;;  %v673_v0 = vmax.f32 %v629_v57, 0.0 }
 0x1e3   : > { %v624_v63 = vadd.f32 %v950_v41, %v623_v62  ;;  %v671_v2 = vmax.f32 %v621_v59, 0.0 }
 0x1e4   : > { %v674_v1 = vmax.f32 %v632_v61, 0.0 }
 0x1e5   : > { %v672_v3 = vmax.f32 %v624_v63, 0.0 }
 0x1e6   : > { %v703_v4 = vpack.c.bf16 %v674_v1, %v673_v0 }
 0x1e7   : > { %v702_v5 = vpack.c.bf16 %v672_v3, %v671_v2  ;;  %v1076_v6 = vpop.f32.mrb[8].mxu1 }
 0x1e8   : > { %v645_v7 = vadd.f32 %v1076_v6, %v950_v41  ;;  %v636_v8 = vpop.f32.mrb[9].mxu1 }
 0x1e9   : > { %v637_v9 = vadd.f32 %v950_v41, %v636_v8  ;;  %v1077_v10 = vpop.f32.mrb[10].mxu1  ;;  %1102 = vmatprep.mubr.bf16.mxu0 %v702_v5 }
 0x1ea   : > { %v648_v11 = vadd.f32 %v1077_v10, %v950_v41  ;;  %v639_v12 = vpop.f32.mrb[11].mxu1  ;;  %1103 = vmatmul.mubr.bf16.gmra.mrb[20].mxu0 %v703_v4  ;;  %v677_v14 = vmax.f32 %v645_v7, 0.0 }
 0x1eb   : > { %v640_v13 = vadd.f32 %v950_v41, %v639_v12  ;;  %v675_v16 = vmax.f32 %v637_v9, 0.0 }
 0x1ec   : > { %v678_v15 = vmax.f32 %v648_v11, 0.0 }
 0x1ed   : > { %v676_v17 = vmax.f32 %v640_v13, 0.0 }
 0x1ee   : > { %v705_v18 = vpack.c.bf16 %v678_v15, %v677_v14 }
 0x1ef   : > { %v704_v19 = vpack.c.bf16 %v676_v17, %v675_v16  ;;  %v1080_v20 = vpop.f32.mrb[12].mxu1 }
 0x1f0   : > { %v661_v21 = vadd.f32 %v1080_v20, %v950_v41  ;;  %v652_v22 = vpop.f32.mrb[13].mxu1 }
 0x1f1   : > { %v653_v23 = vadd.f32 %v950_v41, %v652_v22  ;;  %v1081_v24 = vpop.f32.mrb[14].mxu1  ;;  %1106 = vmatprep.mubr.bf16.mxu1 %v704_v19 }
 0x1f2   : > { %v664_v25 = vadd.f32 %v1081_v24, %v950_v41  ;;  %v655_v26 = vpop.f32.mrb[15].mxu1  ;;  %1107 = vmatmul.mubr.bf16.vlgmr.msra.gmra.mrb[16].mxu1 %v705_v18  ;;  %v681_v28 = vmax.f32 %v661_v21, 0.0 }
 0x1f3   : > { %v656_v27 = vadd.f32 %v950_v41, %v655_v26  ;;  %v679_v30 = vmax.f32 %v653_v23, 0.0 }
 0x1f4   : > { %v682_v29 = vmax.f32 %v664_v25, 0.0 }
 0x1f5   : > { %v680_v31 = vmax.f32 %v656_v27, 0.0 }
 0x1f6   : > { %v707_v32 = vpack.c.bf16 %v682_v29, %v681_v28 }
 0x1f7   : > { %v706_v33 = vpack.c.bf16 %v680_v31, %v679_v30 }
 0x1f9   : > { %1110 = vmatprep.mubr.bf16.mxu1 %v706_v33 }
 0x1fa   : > { %1111 = vmatmul.mubr.bf16.gmra.mrb[20].mxu1 %v707_v32 }
 0x2b5   : > { %v1100_v35 = vpop.f32.mrb[16].mxu0 }
 0x2b6   : > { %v805_v36 = vadd.f32 %v1100_v35, %v959_v34  ;;  %v796_v37 = vpop.f32.mrb[17].mxu0 }
 0x2b7   : > { %v797_v38 = vadd.f32 %v959_v34, %v796_v37  ;;  %v1101_v39 = vpop.f32.mrb[18].mxu0 }
 0x2b8   : > { %862 = vst.msk [vmem:[%s1366_s25 + $0x10] sm:$0xff] %vm859_vm0, %v805_v36  ;;  %v808_v40 = vadd.f32 %v1101_v39, %v959_v34  ;;  %v799_v41 = vpop.f32.mrb[19].mxu0 }
 0x2b9   : > { %860 = vst.msk [vmem:[%s1366_s25] sm:$0xff] %vm859_vm0, %v797_v38  ;;  %v800_v42 = vadd.f32 %v959_v34, %v799_v41 }
 0x2ba   : > { %863 = vst.msk [vmem:[%s1366_s25 + $0x18] sm:$0xff] %vm859_vm0, %v808_v40 }
 0x2bb   : > { %861 = vst.msk [vmem:[%s1366_s25 + $0x8] sm:$0xff] %vm859_vm0, %v800_v42 }
 0x2bd   : > { %v1104_v43 = vpop.f32.mrb[20].mxu0 }
 0x2be   : > { %v821_v44 = vadd.f32 %v1104_v43, %v959_v34  ;;  %v812_v45 = vpop.f32.mrb[21].mxu0 }
 0x2bf   : > { %v813_v46 = vadd.f32 %v959_v34, %v812_v45  ;;  %v1105_v47 = vpop.f32.mrb[22].mxu0 }
 0x2c0   : > { %866 = vst.msk [vmem:[%s1366_s25 + $0x30] sm:$0xff] %vm859_vm0, %v821_v44  ;;  %v824_v48 = vadd.f32 %v1105_v47, %v959_v34  ;;  %v815_v49 = vpop.f32.mrb[23].mxu0 }
 0x2c1   : > { %864 = vst.msk [vmem:[%s1366_s25 + $0x20] sm:$0xff] %vm859_vm0, %v813_v46  ;;  %v816_v50 = vadd.f32 %v959_v34, %v815_v49 }
 0x2c2   : > { %867 = vst.msk [vmem:[%s1366_s25 + $0x38] sm:$0xff] %vm859_vm0, %v824_v48 }
 0x2c3   : > { %865 = vst.msk [vmem:[%s1366_s25 + $0x28] sm:$0xff] %vm859_vm0, %v816_v50 }
 0x2c5   : > { %v1108_v51 = vpop.f32.mrb[16].mxu1 }
 0x2c6   : > { %v837_v52 = vadd.f32 %v1108_v51, %v959_v34  ;;  %v828_v53 = vpop.f32.mrb[17].mxu1 }
 0x2c7   : > { %v829_v54 = vadd.f32 %v959_v34, %v828_v53  ;;  %v1109_v55 = vpop.f32.mrb[18].mxu1 }
 0x2c8   : > { %870 = vst.msk [vmem:[%s1366_s25 + $0x50] sm:$0xff] %vm859_vm0, %v837_v52  ;;  %v840_v56 = vadd.f32 %v1109_v55, %v959_v34  ;;  %v831_v57 = vpop.f32.mrb[19].mxu1 }
 0x2c9   : > { %868 = vst.msk [vmem:[%s1366_s25 + $0x40] sm:$0xff] %vm859_vm0, %v829_v54  ;;  %v832_v58 = vadd.f32 %v959_v34, %v831_v57 }
 0x2ca   : > { %871 = vst.msk [vmem:[%s1366_s25 + $0x58] sm:$0xff] %vm859_vm0, %v840_v56 }
 0x2cb   : > { %869 = vst.msk [vmem:[%s1366_s25 + $0x48] sm:$0xff] %vm859_vm0, %v832_v58 }
 0x2cd   : > { %v1112_v59 = vpop.f32.mrb[20].mxu1 }
 0x2ce   : > { %v853_v60 = vadd.f32 %v1112_v59, %v959_v34  ;;  %v844_v61 = vpop.f32.mrb[21].mxu1 }
 0x2cf   : > { %v845_v62 = vadd.f32 %v959_v34, %v844_v61  ;;  %v1113_v63 = vpop.f32.mrb[22].mxu1 }
 0x2d0   : > { %874 = vst.msk [vmem:[%s1366_s25 + $0x70] sm:$0xff] %vm859_vm0, %v853_v60  ;;  %v856_v0 = vadd.f32 %v1113_v63, %v959_v34  ;;  %v847_v1 = vpop.f32.mrb[23].mxu1 }
 0x2d1   : > { %872 = vst.msk [vmem:[%s1366_s25 + $0x60] sm:$0xff] %vm859_vm0, %v845_v62  ;;  %v848_v2 = vadd.f32 %v959_v34, %v847_v1 }
 0x2d2   : > { %875 = vst.msk [vmem:[%s1366_s25 + $0x78] sm:$0xff] %vm859_vm0, %v856_v0 }
 0x2d3   : > { %873 = vst.msk [vmem:[%s1366_s25 + $0x68] sm:$0xff] %vm859_vm0, %v848_v2 }
 0x2d4 PF: > { %s17_s24 = sadd.s32 1, %s1168_s24  }
 0x2d5   : > { %p14_p4 = scmp.ge.s32.totalorder %s17_s24, 4  }
 0x2d7   :  { %16 = sbr.rel (!%p14_p4) target bundleno = 1 (0x1), region = 78 }

// kernel: fnn_forward.1
= control target key start
LH: loop header
LB: loop body
LE: loop exit
PB: predicated region body
PF: predicated region fallthrough
CT: control target
= control target key end

     0   :  { %s1210_s24 = smov 0   ;;  %s1403_s0 = inlined_call_operand.vmem [shape: f32[256,128], index: 0, kind: input, shape index: {}]   ;;  %s1404_s1 = inlined_call_operand.vmem [shape: bf16[128,128], index: 1, kind: input, shape index: {}]   ;;  %s1405_s2 = inlined_call_operand.vmem [shape: f32[1,128], index: 2, kind: input, shape index: {}]   ;;  %s1406_s3 = inlined_call_operand.vmem [shape: bf16[128,128], index: 3, kind: input, shape index: {}]   ;;  %s1407_s4 = inlined_call_operand.vmem [shape: f32[1,128], index: 4, kind: input, shape index: {}]   ;;  %s1408_s5 = inlined_call_operand.vmem [shape: bf16[128,128], index: 5, kind: input, shape index: {}]   ;;  %s1409_s6 = inlined_call_operand.vmem [shape: f32[1,128], index: 6, kind: input, shape index: {}]   ;;  %s1410_s7 = inlined_call_operand.vmem [shape: f32[256,8], index: 7, kind: output, shape index: {}]  }
   0x1 LB: > { %s932_s25 = sadd.s32 4294967295, %s1168_s24   ;;  %p936_p0 = scmp.ge.s32.totalorder %s1168_s24, 1  ;;  %s1168_s24 = sphi %s1210_s24, %s17_s24  }
   0x2   : > { %p238_p1 = scmp.lt.s32.totalorder %s1168_s24, 3 }
   0x4   : > { %p239_p2 = pnand %p936_p0, %p238_p1 }
   0x5   : > { %v1138_v0 = vld [vmem:[%s1404_s1] sm:$0xff] (!%p239_p2)   ;;  %s937_s28 = sshll.u32 (!%p239_p2), %s932_s25, 4  ;;  %v1139_v1 = vld [vmem:[%s1404_s1 + $0x8] sm:$0xff] (!%p239_p2)   ;;  %v1140_v2 = vld [vmem:[%s1404_s1 + $0x10] sm:$0xff] (!%p239_p2)   ;;  %vm859_vm0 = vcmask (!%p239_p2), 64512  }
   0x6   : > { %242 = sbr.rel (%p239_p2) target bundleno = 724 (0x2d4), region = 48  ;;  %p271_p3 = scmp.lt.s32.totalorder (!%p239_p2), %s937_s28, 31  ;;  %1018 = vmatprep.subr.bf16.mxu0 (!%p239_p2), %v1138_v0  ;;  %v1141_v3 = vld [vmem:[%s1404_s1 + $0x18] sm:$0xff] (!%p239_p2)   ;;  %v1142_v7 = vld [vmem:[%s1404_s1 + $0x20] sm:$0xff] (!%p239_p2)   ;;  %v1147_v9 = vld [vmem:[%s1406_s3 + $0x8] sm:$0xff] (!%p239_p2)  }
   0x7   : > { %1019 = vmatpush3.bf16.msra.mxu0 (!%p239_p2), %v1138_v0  ;;  %v1146_v8 = vld [vmem:[%s1406_s3] sm:$0xff] (!%p239_p2)   ;;  %v1143_v10 = vld [vmem:[%s1404_s1 + $0x28] sm:$0xff] (!%p239_p2)   ;;  %v1148_v11 = vld [vmem:[%s1406_s3 + $0x10] sm:$0xff] (!%p239_p2)  }
   0x8   : > { %1020 = vmatprep.subr.bf16.mxu0 (!%p239_p2), %v1139_v1  ;;  %1050 = vmatprep.subr.bf16.mxu1 (!%p239_p2), %v1146_v8  ;;  %v1144_v12 = vld [vmem:[%s1404_s1 + $0x30] sm:$0xff] (!%p239_p2)   ;;  %v1149_v13 = vld [vmem:[%s1406_s3 + $0x18] sm:$0xff] (!%p239_p2)   ;;  %v1150_v15 = vld [vmem:[%s1406_s3 + $0x20] sm:$0xff] (!%p239_p2)  }
   0x9   : > { %1051 = vmatpush3.bf16.msra.mxu1 (!%p239_p2), %v1146_v8  ;;  %v1145_v14 = vld [vmem:[%s1404_s1 + $0x38] sm:$0xff] (!%p239_p2)   ;;  %v1151_v21 = vld [vmem:[%s1406_s3 + $0x28] sm:$0xff] (!%p239_p2)   ;;  %v1152_v38 = vld [vmem:[%s1406_s3 + $0x30] sm:$0xff] (!%p239_p2)  }
   0xa   : > { %1052 = vmatprep.subr.bf16.mxu1 (!%p239_p2), %v1147_v9  ;;  %v1153_v39 = vld [vmem:[%s1406_s3 + $0x38] sm:$0xff] (!%p239_p2)   ;;  %v1154_v40 = vld [vmem:[%s1408_s5] sm:$0xff] (!%p239_p2)   ;;  %v1155_v41 = vld [vmem:[%s1408_s5 + $0x8] sm:$0xff] (!%p239_p2)  }
   0xb   : > { %1021 = vmatpush3.bf16.msra.mxu0 (!%p239_p2), %v1139_v1  ;;  %v1156_v42 = vld [vmem:[%s1408_s5 + $0x10] sm:$0xff] (!%p239_p2)   ;;  %v1304_v43 = vld [vmem:[%s1408_s5 + $0x18] sm:$0xff] (!%p239_p2)   ;;  %v1310_v44 = vld [vmem:[%s1408_s5 + $0x20] sm:$0xff] (!%p239_p2)  }
   0xc   : > { %1022 = vmatprep.subr.bf16.mxu0 (!%p239_p2), %v1140_v2  ;;  %v1317_v45 = vld [vmem:[%s1408_s5 + $0x28] sm:$0xff] (!%p239_p2)   ;;  %v1325_v46 = vld [vmem:[%s1405_s2] ss:$0 sm:$0xff] (!%p239_p2) }
   0xd   : > { %s1412_s28 = smov (!%p271_p3, %s937_s28), 31  ;;  %1053 = vmatpush3.bf16.msra.mxu1 %v1147_v9 }
   0xe   : > { %s938_s10 = sshll.u32 %s1412_s28, 3  ;;  %1054 = vmatprep.subr.bf16.mxu1 %v1148_v11 }
   0xf   : > { %s1235_s13 = scalar_lea.vmem %s1403_s0, %s938_s10  ;;  %1023 = vmatpush3.bf16.msra.mxu0 %v1140_v2  ;;  %s1366_s25 = scalar_lea.vmem %s1410_s7, %s938_s10 }
  0x10   : > { %v283_v4 = vld [vmem:[%s1235_s13] sm:$0xff]  ;;  %v284_v5 = vld [vmem:[%s1235_s13 + $0x8] sm:$0xff]  ;;  %1024 = vmatprep.subr.bf16.mxu0 %v1141_v3  ;;  %v285_v16 = vld [vmem:[%s1235_s13 + $0x10] sm:$0xff] }
  0x11   : > { %v316_v6 = vpack.c.bf16 %v284_v5, %v283_v4  ;;  %1055 = vmatpush3.bf16.msra.mxu1 %v1148_v11  ;;  %v286_v17 = vld [vmem:[%s1235_s13 + $0x18] sm:$0xff]  ;;  %v287_v18 = vld [vmem:[%s1235_s13 + $0x20] sm:$0xff]  ;;  %v288_v19 = vld [vmem:[%s1235_s13 + $0x28] sm:$0xff] }
  0x12   : > { %1056 = vmatprep.subr.bf16.mxu1 %v1149_v13  ;;  %v317_v20 = vpack.c.bf16 %v286_v17, %v285_v16  ;;  %v318_v22 = vpack.c.bf16 %v288_v19, %v287_v18  ;;  %v289_v23 = vld [vmem:[%s1235_s13 + $0x30] sm:$0xff]  ;;  %v290_v24 = vld [vmem:[%s1235_s13 + $0x38] sm:$0xff]  ;;  %v291_v25 = vld [vmem:[%s1235_s13 + $0x40] sm:$0xff] }
  0x13   : > { %1034 = vmatprep.mubr.bf16.mxu0 %v316_v6  ;;  %1025 = vmatpush3.bf16.msra.mxu0 %v1141_v3  ;;  %v292_v26 = vld [vmem:[%s1235_s13 + $0x48] sm:$0xff]  ;;  %v319_v27 = vpack.c.bf16 %v290_v24, %v289_v23  ;;  %v293_v29 = vld [vmem:[%s1235_s13 + $0x50] sm:$0xff]  ;;  %v294_v30 = vld [vmem:[%s1235_s13 + $0x58] sm:$0xff] }
  0x14   : > { %1026 = vmatprep.subr.bf16.mxu0 %v1142_v7  ;;  %v320_v28 = vpack.c.bf16 %v292_v26, %v291_v25  ;;  %v295_v31 = vld [vmem:[%s1235_s13 + $0x60] sm:$0xff]  ;;  %v296_v32 = vld [vmem:[%s1235_s13 + $0x68] sm:$0xff]  ;;  %v321_v33 = vpack.c.bf16 %v294_v30, %v293_v29  ;;  %v297_v35 = vld [vmem:[%s1235_s13 + $0x70] sm:$0xff] }
  0x15   : > { %1057 = vmatpush3.bf16.msra.mxu1 %v1149_v13  ;;  %v322_v34 = vpack.c.bf16 %v296_v32, %v295_v31  ;;  %v298_v36 = vld [vmem:[%s1235_s13 + $0x78] sm:$0xff] }
  0x16   : > { %1058 = vmatprep.subr.bf16.mxu1 %v1150_v15  ;;  %v323_v37 = vpack.c.bf16 %v298_v36, %v297_v35 }
  0x17   : > { %1027 = vmatpush3.bf16.msra.mxu0 %v1142_v7 }
  0x18   : > { %1028 = vmatprep.subr.bf16.mxu0 %v1143_v10 }
  0x19   : > { %1059 = vmatpush3.bf16.msra.mxu1 %v1150_v15 }
  0x1a   : > { %1060 = vmatprep.subr.bf16.mxu1 %v1151_v21 }
  0x1b   : > { %1029 = vmatpush3.bf16.msra.mxu0 %v1143_v10 }
  0x1c   : > { %1030 = vmatprep.subr.bf16.mxu0 %v1144_v12 }
  0x1d   : > { %1061 = vmatpush3.bf16.msra.mxu1 %v1151_v21 }
  0x1e   : > { %1062 = vmatprep.subr.bf16.mxu1 %v1152_v38 }
  0x1f   : > { %1031 = vmatpush3.bf16.msra.mxu0 %v1144_v12 }
  0x20   : > { %1032 = vmatprep.subr.bf16.mxu0 %v1145_v14 }
  0x21   : > { %1063 = vmatpush3.bf16.msra.mxu1 %v1152_v38 }
  0x22   : > { %1064 = vmatprep.subr.bf16.mxu1 %v1153_v39 }
  0x23   : > { %1033 = vmatpush3.bf16.msra.mxu0 %v1145_v14 }
  0x24   : > { %1082 = vmatprep.subr.bf16.mxu0 %v1154_v40 }
  0x25   : > { %1065 = vmatpush3.bf16.msra.mxu1 %v1153_v39  ;;  %v1160_v39 = vld [vmem:[%s1408_s5 + $0x30] sm:$0xff]  }
  0x26   : > { %1035 = vmatmul.mubr.bf16.vlgmr.msra.gmra.mrb[0].mxu0 %v317_v20  ;;  %1114 = vmatprep.subr.bf16.mxu1 %v1154_v40 }
  0x27   : > { %1038 = vmatprep.mubr.bf16.mxu0 %v318_v22  ;;  %1083 = vmatpush3.bf16.msra.mxu0 %v1154_v40 }
  0x28   : > { %1084 = vmatprep.subr.bf16.mxu0 %v1155_v41 }
  0x2b   : > { %1085 = vmatpush3.bf16.msra.mxu0 %v1155_v41 }
  0x2c   : > { %1086 = vmatprep.subr.bf16.mxu0 %v1156_v42 }
  0x2e   : > { %1039 = vmatmul.mubr.bf16.gmra.mrb[4].mxu0 %v319_v27 }
  0x2f   : > { %1042 = vmatprep.mubr.bf16.mxu0 %v320_v28  ;;  %1087 = vmatpush3.bf16.msra.mxu0 %v1156_v42 }
  0x30   : > { %1088 = vmatprep.subr.bf16.mxu0 %v1304_v43 }
  0x33   : > { %1089 = vmatpush3.bf16.msra.mxu0 %v1304_v43 }
  0x34   : > { %1090 = vmatprep.subr.bf16.mxu0 %v1310_v44 }
  0x36   : > { %1043 = vmatmul.mubr.bf16.gmra.mrb[8].mxu0 %v321_v33 }
  0x37   : > { %1046 = vmatprep.mubr.bf16.mxu0 %v322_v34  ;;  %1091 = vmatpush3.bf16.msra.mxu0 %v1310_v44 }
  0x38   : > { %1092 = vmatprep.subr.bf16.mxu0 %v1317_v45 }
  0x3b   : > { %1093 = vmatpush3.bf16.msra.mxu0 %v1317_v45 }
  0x3c   : > { %1094 = vmatprep.subr.bf16.mxu0 %v1160_v39 }
  0x3e   : > { %1047 = vmatmul.mubr.bf16.gmra.mrb[12].mxu0 %v323_v37 }
  0x3f   : > { %1095 = vmatpush3.bf16.msra.mxu0 %v1160_v39 }
  0xf9   : > { %v1036_v47 = vpop.f32.mrb[0].mxu0 }
  0xfa   : > { %v421_v48 = vadd.f32 %v1036_v47, %v1325_v46  ;;  %v412_v49 = vpop.f32.mrb[1].mxu0 }
  0xfb   : > { %v413_v50 = vadd.f32 %v1325_v46, %v412_v49  ;;  %v1037_v51 = vpop.f32.mrb[2].mxu0 }
  0xfc   : > { %v424_v52 = vadd.f32 %v1037_v51, %v1325_v46  ;;  %v415_v53 = vpop.f32.mrb[3].mxu0  ;;  %v477_v55 = vmax.f32 %v421_v48, 0.0 }
  0xfd   : > { %v416_v54 = vadd.f32 %v1325_v46, %v415_v53  ;;  %v475_v57 = vmax.f32 %v413_v50, 0.0 }
  0xfe   : > { %v478_v56 = vmax.f32 %v424_v52, 0.0 }
  0xff   : > { %v476_v58 = vmax.f32 %v416_v54, 0.0 }
 0x100   : > { %v509_v59 = vpack.c.bf16 %v478_v56, %v477_v55 }
 0x101   : > { %v1040_v60 = vpop.f32.mrb[4].mxu0  ;;  %v508_v61 = vpack.c.bf16 %v476_v58, %v475_v57 }
 0x102   : > { %v437_v62 = vadd.f32 %v1040_v60, %v1325_v46  ;;  %v428_v63 = vpop.f32.mrb[5].mxu0 }
 0x103   : > { %v429_v0 = vadd.f32 %v1325_v46, %v428_v63  ;;  %v1041_v1 = vpop.f32.mrb[6].mxu0  ;;  %1066 = vmatprep.mubr.bf16.mxu1 %v508_v61 }
 0x104   : > { %v440_v2 = vadd.f32 %v1041_v1, %v1325_v46  ;;  %v431_v3 = vpop.f32.mrb[7].mxu0  ;;  %1067 = vmatmul.mubr.bf16.vlgmr.msra.gmra.mrb[0].mxu1 %v509_v59  ;;  %v481_v5 = vmax.f32 %v437_v62, 0.0 }
 0x105   : > { %v432_v4 = vadd.f32 %v1325_v46, %v431_v3  ;;  %1122 = vmatpush3.bf16.msra.mxu1 %v1154_v40  ;;  %v479_v7 = vmax.f32 %v429_v0, 0.0  ;;  %v1161_v40 = vld [vmem:[%s1408_s5 + $0x38] sm:$0xff]  }
 0x106   : > { %v482_v6 = vmax.f32 %v440_v2, 0.0  ;;  %1115 = vmatprep.subr.bf16.mxu1 %v1155_v41  ;;  %1096 = vmatprep.subr.bf16.mxu0 %v1161_v40 }
 0x107   : > { %v480_v8 = vmax.f32 %v432_v4, 0.0  ;;  %1097 = vmatpush3.bf16.msra.mxu0 %v1161_v40 }
 0x108   : > { %v511_v9 = vpack.c.bf16 %v482_v6, %v481_v5 }
 0x109   : > { %v510_v10 = vpack.c.bf16 %v480_v8, %v479_v7  ;;  %v1044_v11 = vpop.f32.mrb[8].mxu0  ;;  %1123 = vmatpush3.bf16.msra.mxu1 %v1155_v41  ;;  %v950_v41 = vld [vmem:[%s1407_s4] ss:$0 sm:$0xff] }
 0x10a   : > { %v453_v12 = vadd.f32 %v1044_v11, %v1325_v46  ;;  %v444_v13 = vpop.f32.mrb[9].mxu0  ;;  %1116 = vmatprep.subr.bf16.mxu1 %v1156_v42 }
 0x10b   : > { %v445_v14 = vadd.f32 %v1325_v46, %v444_v13  ;;  %v1045_v15 = vpop.f32.mrb[10].mxu0  ;;  %1070 = vmatprep.mubr.bf16.mxu1 %v510_v10 }
 0x10c   : > { %v456_v16 = vadd.f32 %v1045_v15, %v1325_v46  ;;  %v447_v17 = vpop.f32.mrb[11].mxu0  ;;  %1071 = vmatmul.mubr.bf16.gmra.mrb[4].mxu1 %v511_v9  ;;  %v485_v19 = vmax.f32 %v453_v12, 0.0 }
 0x10d   : > { %v448_v18 = vadd.f32 %v1325_v46, %v447_v17  ;;  %1124 = vmatpush3.bf16.msra.mxu1 %v1156_v42  ;;  %v483_v21 = vmax.f32 %v445_v14, 0.0 }
 0x10e   : > { %v486_v20 = vmax.f32 %v456_v16, 0.0  ;;  %1117 = vmatprep.subr.bf16.mxu1 %v1304_v43 }
 0x10f   : > { %v484_v22 = vmax.f32 %v448_v18, 0.0 }
 0x110   : > { %v513_v23 = vpack.c.bf16 %v486_v20, %v485_v19 }
 0x111   : > { %v512_v24 = vpack.c.bf16 %v484_v22, %v483_v21  ;;  %v1048_v25 = vpop.f32.mrb[12].mxu0  ;;  %1125 = vmatpush3.bf16.msra.mxu1 %v1304_v43 }
 0x112   : > { %v469_v26 = vadd.f32 %v1048_v25, %v1325_v46  ;;  %v460_v27 = vpop.f32.mrb[13].mxu0  ;;  %1118 = vmatprep.subr.bf16.mxu1 %v1310_v44 }
 0x113   : > { %v461_v28 = vadd.f32 %v1325_v46, %v460_v27  ;;  %v1049_v29 = vpop.f32.mrb[14].mxu0  ;;  %1074 = vmatprep.mubr.bf16.mxu1 %v512_v24 }
 0x114   : > { %v472_v30 = vadd.f32 %v1049_v29, %v1325_v46  ;;  %v463_v31 = vpop.f32.mrb[15].mxu0  ;;  %1075 = vmatmul.mubr.bf16.gmra.mrb[8].mxu1 %v513_v23  ;;  %v489_v33 = vmax.f32 %v469_v26, 0.0 }
 0x115   : > { %v464_v32 = vadd.f32 %v1325_v46, %v463_v31  ;;  %1126 = vmatpush3.bf16.msra.mxu1 %v1310_v44  ;;  %v487_v35 = vmax.f32 %v461_v28, 0.0 }
 0x116   : > { %v490_v34 = vmax.f32 %v472_v30, 0.0  ;;  %1119 = vmatprep.subr.bf16.mxu1 %v1317_v45 }
 0x117   : > { %v488_v36 = vmax.f32 %v464_v32, 0.0 }
 0x118   : > { %v515_v37 = vpack.c.bf16 %v490_v34, %v489_v33  ;;  %v959_v34 = vld [vmem:[%s1409_s6] ss:$0 sm:$0xff] }
 0x119   : > { %v514_v38 = vpack.c.bf16 %v488_v36, %v487_v35  ;;  %1127 = vmatpush3.bf16.msra.mxu1 %v1317_v45 }
 0x11a   : > { %1120 = vmatprep.subr.bf16.mxu1 %v1160_v39 }
 0x11b   : > { %1078 = vmatprep.mubr.bf16.mxu1 %v514_v38 }
 0x11c   : > { %1079 = vmatmul.mubr.bf16.gmra.mrb[12].mxu1 %v515_v37 }
 0x11d   : > { %1128 = vmatpush3.bf16.msra.mxu1 %v1160_v39 }
 0x11e   : > { %1121 = vmatprep.subr.bf16.mxu1 %v1161_v40 }
 0x121   : > { %1129 = vmatpush3.bf16.msra.mxu1 %v1161_v40 }
 0x1d7   : > { %v1068_v42 = vpop.f32.mrb[0].mxu1 }
 0x1d8   : > { %v613_v43 = vadd.f32 %v1068_v42, %v950_v41  ;;  %v604_v44 = vpop.f32.mrb[1].mxu1 }
 0x1d9   : > { %v605_v45 = vadd.f32 %v950_v41, %v604_v44  ;;  %v1069_v46 = vpop.f32.mrb[2].mxu1 }
 0x1da   : > { %v616_v47 = vadd.f32 %v1069_v46, %v950_v41  ;;  %v607_v48 = vpop.f32.mrb[3].mxu1  ;;  %v669_v50 = vmax.f32 %v613_v43, 0.0 }
 0x1db   : > { %v608_v49 = vadd.f32 %v950_v41, %v607_v48  ;;  %v667_v52 = vmax.f32 %v605_v45, 0.0 }
 0x1dc   : > { %v670_v51 = vmax.f32 %v616_v47, 0.0 }
 0x1dd   : > { %v668_v53 = vmax.f32 %v608_v49, 0.0 }
 0x1de   : > { %v701_v54 = vpack.c.bf16 %v670_v51, %v669_v50 }
 0x1df   : > { %v700_v55 = vpack.c.bf16 %v668_v53, %v667_v52  ;;  %v1072_v56 = vpop.f32.mrb[4].mxu1 }
 0x1e0   : > { %v629_v57 = vadd.f32 %v1072_v56, %v950_v41  ;;  %v620_v58 = vpop.f32.mrb[5].mxu1 }
 0x1e1   : > { %v621_v59 = vadd.f32 %v950_v41, %v620_v58  ;;  %v1073_v60 = vpop.f32.mrb[6].mxu1  ;;  %1098 = vmatprep.mubr.bf16.mxu0 %v700_v55 }
 0x1e2   : > { %v632_v61 = vadd.f32 %v1073_v60, %v950_v41  ;;  %v623_v62 = vpop.f32.mrb[7].mxu1  ;;  %1099 = vmatmul.mubr.bf16.vlgmr.msra.gmra.mrb[16].mxu0 %v701_v54  ;;  %v673_v0 = vmax.f32 %v629_v57, 0.0 }
 0x1e3   : > { %v624_v63 = vadd.f32 %v950_v41, %v623_v62  ;;  %v671_v2 = vmax.f32 %v621_v59, 0.0 }
 0x1e4   : > { %v674_v1 = vmax.f32 %v632_v61, 0.0 }
 0x1e5   : > { %v672_v3 = vmax.f32 %v624_v63, 0.0 }
 0x1e6   : > { %v703_v4 = vpack.c.bf16 %v674_v1, %v673_v0 }
 0x1e7   : > { %v702_v5 = vpack.c.bf16 %v672_v3, %v671_v2  ;;  %v1076_v6 = vpop.f32.mrb[8].mxu1 }
 0x1e8   : > { %v645_v7 = vadd.f32 %v1076_v6, %v950_v41  ;;  %v636_v8 = vpop.f32.mrb[9].mxu1 }
 0x1e9   : > { %v637_v9 = vadd.f32 %v950_v41, %v636_v8  ;;  %v1077_v10 = vpop.f32.mrb[10].mxu1  ;;  %1102 = vmatprep.mubr.bf16.mxu0 %v702_v5 }
 0x1ea   : > { %v648_v11 = vadd.f32 %v1077_v10, %v950_v41  ;;  %v639_v12 = vpop.f32.mrb[11].mxu1  ;;  %1103 = vmatmul.mubr.bf16.gmra.mrb[20].mxu0 %v703_v4  ;;  %v677_v14 = vmax.f32 %v645_v7, 0.0 }
 0x1eb   : > { %v640_v13 = vadd.f32 %v950_v41, %v639_v12  ;;  %v675_v16 = vmax.f32 %v637_v9, 0.0 }
 0x1ec   : > { %v678_v15 = vmax.f32 %v648_v11, 0.0 }
 0x1ed   : > { %v676_v17 = vmax.f32 %v640_v13, 0.0 }
 0x1ee   : > { %v705_v18 = vpack.c.bf16 %v678_v15, %v677_v14 }
 0x1ef   : > { %v704_v19 = vpack.c.bf16 %v676_v17, %v675_v16  ;;  %v1080_v20 = vpop.f32.mrb[12].mxu1 }
 0x1f0   : > { %v661_v21 = vadd.f32 %v1080_v20, %v950_v41  ;;  %v652_v22 = vpop.f32.mrb[13].mxu1 }
 0x1f1   : > { %v653_v23 = vadd.f32 %v950_v41, %v652_v22  ;;  %v1081_v24 = vpop.f32.mrb[14].mxu1  ;;  %1106 = vmatprep.mubr.bf16.mxu1 %v704_v19 }
 0x1f2   : > { %v664_v25 = vadd.f32 %v1081_v24, %v950_v41  ;;  %v655_v26 = vpop.f32.mrb[15].mxu1  ;;  %1107 = vmatmul.mubr.bf16.vlgmr.msra.gmra.mrb[16].mxu1 %v705_v18  ;;  %v681_v28 = vmax.f32 %v661_v21, 0.0 }
 0x1f3   : > { %v656_v27 = vadd.f32 %v950_v41, %v655_v26  ;;  %v679_v30 = vmax.f32 %v653_v23, 0.0 }
 0x1f4   : > { %v682_v29 = vmax.f32 %v664_v25, 0.0 }
 0x1f5   : > { %v680_v31 = vmax.f32 %v656_v27, 0.0 }
 0x1f6   : > { %v707_v32 = vpack.c.bf16 %v682_v29, %v681_v28 }
 0x1f7   : > { %v706_v33 = vpack.c.bf16 %v680_v31, %v679_v30 }
 0x1f9   : > { %1110 = vmatprep.mubr.bf16.mxu1 %v706_v33 }
 0x1fa   : > { %1111 = vmatmul.mubr.bf16.gmra.mrb[20].mxu1 %v707_v32 }
 0x2b5   : > { %v1100_v35 = vpop.f32.mrb[16].mxu0 }
 0x2b6   : > { %v805_v36 = vadd.f32 %v1100_v35, %v959_v34  ;;  %v796_v37 = vpop.f32.mrb[17].mxu0 }
 0x2b7   : > { %v797_v38 = vadd.f32 %v959_v34, %v796_v37  ;;  %v1101_v39 = vpop.f32.mrb[18].mxu0 }
 0x2b8   : > { %862 = vst.msk [vmem:[%s1366_s25 + $0x10] sm:$0xff] %vm859_vm0, %v805_v36  ;;  %v808_v40 = vadd.f32 %v1101_v39, %v959_v34  ;;  %v799_v41 = vpop.f32.mrb[19].mxu0 }
 0x2b9   : > { %860 = vst.msk [vmem:[%s1366_s25] sm:$0xff] %vm859_vm0, %v797_v38  ;;  %v800_v42 = vadd.f32 %v959_v34, %v799_v41 }
 0x2ba   : > { %863 = vst.msk [vmem:[%s1366_s25 + $0x18] sm:$0xff] %vm859_vm0, %v808_v40 }
 0x2bb   : > { %861 = vst.msk [vmem:[%s1366_s25 + $0x8] sm:$0xff] %vm859_vm0, %v800_v42 }
 0x2bd   : > { %v1104_v43 = vpop.f32.mrb[20].mxu0 }
 0x2be   : > { %v821_v44 = vadd.f32 %v1104_v43, %v959_v34  ;;  %v812_v45 = vpop.f32.mrb[21].mxu0 }
 0x2bf   : > { %v813_v46 = vadd.f32 %v959_v34, %v812_v45  ;;  %v1105_v47 = vpop.f32.mrb[22].mxu0 }
 0x2c0   : > { %866 = vst.msk [vmem:[%s1366_s25 + $0x30] sm:$0xff] %vm859_vm0, %v821_v44  ;;  %v824_v48 = vadd.f32 %v1105_v47, %v959_v34  ;;  %v815_v49 = vpop.f32.mrb[23].mxu0 }
 0x2c1   : > { %864 = vst.msk [vmem:[%s1366_s25 + $0x20] sm:$0xff] %vm859_vm0, %v813_v46  ;;  %v816_v50 = vadd.f32 %v959_v34, %v815_v49 }
 0x2c2   : > { %867 = vst.msk [vmem:[%s1366_s25 + $0x38] sm:$0xff] %vm859_vm0, %v824_v48 }
 0x2c3   : > { %865 = vst.msk [vmem:[%s1366_s25 + $0x28] sm:$0xff] %vm859_vm0, %v816_v50 }
 0x2c5   : > { %v1108_v51 = vpop.f32.mrb[16].mxu1 }
 0x2c6   : > { %v837_v52 = vadd.f32 %v1108_v51, %v959_v34  ;;  %v828_v53 = vpop.f32.mrb[17].mxu1 }
 0x2c7   : > { %v829_v54 = vadd.f32 %v959_v34, %v828_v53  ;;  %v1109_v55 = vpop.f32.mrb[18].mxu1 }
 0x2c8   : > { %870 = vst.msk [vmem:[%s1366_s25 + $0x50] sm:$0xff] %vm859_vm0, %v837_v52  ;;  %v840_v56 = vadd.f32 %v1109_v55, %v959_v34  ;;  %v831_v57 = vpop.f32.mrb[19].mxu1 }
 0x2c9   : > { %868 = vst.msk [vmem:[%s1366_s25 + $0x40] sm:$0xff] %vm859_vm0, %v829_v54  ;;  %v832_v58 = vadd.f32 %v959_v34, %v831_v57 }
 0x2ca   : > { %871 = vst.msk [vmem:[%s1366_s25 + $0x58] sm:$0xff] %vm859_vm0, %v840_v56 }
 0x2cb   : > { %869 = vst.msk [vmem:[%s1366_s25 + $0x48] sm:$0xff] %vm859_vm0, %v832_v58 }
 0x2cd   : > { %v1112_v59 = vpop.f32.mrb[20].mxu1 }
 0x2ce   : > { %v853_v60 = vadd.f32 %v1112_v59, %v959_v34  ;;  %v844_v61 = vpop.f32.mrb[21].mxu1 }
 0x2cf   : > { %v845_v62 = vadd.f32 %v959_v34, %v844_v61  ;;  %v1113_v63 = vpop.f32.mrb[22].mxu1 }
 0x2d0   : > { %874 = vst.msk [vmem:[%s1366_s25 + $0x70] sm:$0xff] %vm859_vm0, %v853_v60  ;;  %v856_v0 = vadd.f32 %v1113_v63, %v959_v34  ;;  %v847_v1 = vpop.f32.mrb[23].mxu1 }
 0x2d1   : > { %872 = vst.msk [vmem:[%s1366_s25 + $0x60] sm:$0xff] %vm859_vm0, %v845_v62  ;;  %v848_v2 = vadd.f32 %v959_v34, %v847_v1 }
 0x2d2   : > { %875 = vst.msk [vmem:[%s1366_s25 + $0x78] sm:$0xff] %vm859_vm0, %v856_v0 }
 0x2d3   : > { %873 = vst.msk [vmem:[%s1366_s25 + $0x68] sm:$0xff] %vm859_vm0, %v848_v2 }
 0x2d4 PF: > { %s17_s24 = sadd.s32 1, %s1168_s24  }
 0x2d5   : > { %p14_p4 = scmp.ge.s32.totalorder %s17_s24, 4  }
 0x2d7   :  { %16 = sbr.rel (!%p14_p4) target bundleno = 1 (0x1), region = 78 }

</bundles_post_ra>
